<compile_context>
chip_gen: v5e
topology: v5e:2x2
jax: 0.10.0
libtpu: 0.0.40
codegen_flags: <defaults>
</compile_context>

<pallas_src>
import functools

import numpy as np
import jax
import jax.numpy as jnp
from jax import lax
from jax.experimental import pallas as pl
from jax.experimental.pallas import tpu as pltpu


# ---------------------------------------------------------------------------
# Host-side parameter folding (NumPy, run ONCE).
# ---------------------------------------------------------------------------
def _build_fusion_matrices(fusion_w, fusion_b, C, Fr):
    """FusionLayer conv -> three (2*C*Fr, C*Fr) matrices (one per time tap).

    conv[o, f, t] = sum_{c,df,dt} w_eff[o,c,df,dt] * y[c, f+df-1, t+dt-1]
    with y zero padded.  The x.repeat(1,2,1,1) is folded into
    w_eff = W[:, :C] + W[:, C:]; the frequency shift (df) and its zero
    boundary are folded into these matrices, so inside the kernel only the
    time shift (dt) remains -- handled by slicing a (C*Fr, T+2) buffer.
    Output row index is o*Fr + f, input column index is c*Fr + fi.
    """
    w = np.asarray(fusion_w, np.float32)              # (2C, 2C, 3, 3)
    w_eff = w[:, :C] + w[:, C:]                       # (2C, C, 3, 3)
    A = np.zeros((3, 2 * C * Fr, C * Fr), np.float32)
    for dt in range(3):
        for df in range(3):
            for f in range(Fr):
                fi = f + df - 1
                if 0 <= fi < Fr:
                    A[dt, f::Fr, fi::Fr] += w_eff[:, :, df, dt]
    bias = np.repeat(np.asarray(fusion_b, np.float32), Fr)[:, None]  # (2CFr,1)
    return A, bias


def _build_su_matrix(su_w, su_b, band_lengths, original_lengths, band_cfg,
                     Cin, Cout):
    """SUlayer (per-band ConvTranspose2d + trim + concat) as one dense matrix:
    out[(co,fo), t] = sum_{(ci,fi)} M[(co,fo),(ci,fi)] * fused[(ci,fi), t] + b.
    """
    Fr = int(sum(band_lengths))
    Fr_out = int(sum(original_lengths))
    M = np.zeros((Cout, Fr_out, Cin, Fr), np.float32)
    bvec = np.zeros((Cout, Fr_out), np.float32)
    in_off, out_off = 0, 0
    for i in range(len(band_cfg)):
        L = band_lengths[i]
        k = band_cfg[i]["kernel"]
        s = band_cfg[i]["stride"]
        W = np.asarray(su_w[i], np.float32)[:, :, :, 0]   # (Cin, Cout, k)
        bb = np.asarray(su_b[i], np.float32)              # (Cout,)
        Lfull = (L - 1) * s + k                           # transposed-conv len
        assert original_lengths[i] <= Lfull, "trim assumes original <= full"
        dist = abs(original_lengths[i] - Lfull) // 2
        for f_local in range(original_lengths[i]):
            f_full = f_local + dist
            for l in range(L):
                j = f_full - l * s
                if 0 <= j < k:
                    M[:, out_off + f_local, :, in_off + l] += W[:, :, j].T
            bvec[:, out_off + f_local] = bb
        in_off += L
        out_off += original_lengths[i]
    return (M.reshape(Cout * Fr_out, Cin * Fr),
            bvec.reshape(Cout * Fr_out, 1))


def prepare_decoder_params(fusion_w, fusion_b, su_w, su_b, lengths,
                           original_lengths, band_cfg, C_in, C_out, Fr):
    """Fold all module parameters into matmul form ONCE (off the fwd path)."""
    band_lengths = [lengths[0], lengths[1], Fr - lengths[0] - lengths[1]]
    A, cb = _build_fusion_matrices(fusion_w, fusion_b, C_in, Fr)
    W, sb = _build_su_matrix(su_w, su_b, band_lengths, original_lengths,
                             band_cfg, C_in, C_out)
    params = dict(
        A=jnp.asarray(A, jnp.bfloat16),    # MXU operands in bf16
        cb=jnp.asarray(cb, jnp.float32),   # bias / elementwise stay f32
        W=jnp.asarray(W, jnp.bfloat16),
        sb=jnp.asarray(sb, jnp.float32),
    )
    return params, int(sum(original_lengths))


# ---------------------------------------------------------------------------
# Fused DecoderBlock kernel.
# ---------------------------------------------------------------------------
def _decoder_kernel(x_ref, s_ref, a_ref, cb_ref, w_ref, sb_ref, o_ref, yt_ref):
    # x_ref, s_ref : (1, C*Fr, T)        f32   one batch element
    # a_ref        : (3, 2*C*Fr, C*Fr)   bf16  fusion-conv tap matrices
    # cb_ref       : (2*C*Fr, 1)         f32   fusion-conv bias
    # w_ref        : (R, C*Fr)           bf16  folded SUlayer matrix
    # sb_ref       : (R, 1)              f32   SUlayer bias
    # o_ref        : (1, R, T)           f32   DecoderBlock output
    # yt_ref       : (C*Fr, T+2)         f32   VMEM scratch (time halo)
    CF, T = x_ref.shape[1], x_ref.shape[2]
    CF2 = a_ref.shape[1]                        # 2 * C * Fr

    # FusionLayer input: (x + skip) with a 1-column zero halo along T.
    yt_ref[...] = jnp.zeros_like(yt_ref)
    yt_ref[:, 1:T + 1] = x_ref[0] + s_ref[0]

    # 3x3 conv == 3 MXU matmuls (one per time tap), accumulated in f32.
    acc = jnp.zeros((CF2, T), jnp.float32)
    for dt in range(3):
        acc = acc + jnp.dot(
            a_ref[dt], yt_ref[:, dt:dt + T].astype(jnp.bfloat16),
            preferred_element_type=jnp.float32)
    acc = acc + cb_ref[...]

    # GLU over the channel axis (rows are o*Fr + f, so the channel split is a
    # plain row split).  Elementwise math in f32 (VPU/EUP).
    fused = acc[:CF] * jax.nn.sigmoid(acc[CF:])

    # SUlayer: one MXU matmul over the folded (channel, freq) axis.
    out = jnp.dot(w_ref[...], fused.astype(jnp.bfloat16),
                  preferred_element_type=jnp.float32) + sb_ref[...]
    o_ref[0] = out


@functools.partial(jax.jit, static_argnames=("C_out", "Fr_out"))
def decoder_block_pallas(x, skip, A, cb, W, sb, *, C_out, Fr_out):
    B, C, Fr, T = x.shape
    CF = C * Fr
    R = C_out * Fr_out
    # Free contiguous reshapes only -- no host-side padding / extra copies.
    x2 = x.reshape(B, CF, T)
    s2 = skip.reshape(B, CF, T)
    out2 = pl.pallas_call(
        _decoder_kernel,
        out_shape=jax.ShapeDtypeStruct((B, R, T), jnp.float32),
        grid=(B,),
        in_specs=[
            pl.BlockSpec((1, CF, T), lambda b: (b, 0, 0)),
            pl.BlockSpec((1, CF, T), lambda b: (b, 0, 0)),
            pl.BlockSpec((3, 2 * CF, CF), lambda b: (0, 0, 0)),  # resident
            pl.BlockSpec((2 * CF, 1), lambda b: (0, 0)),
            pl.BlockSpec((R, CF), lambda b: (0, 0)),             # resident
            pl.BlockSpec((R, 1), lambda b: (0, 0)),
        ],
        out_specs=pl.BlockSpec((1, R, T), lambda b: (b, 0, 0)),
        scratch_shapes=[pltpu.VMEM((CF, T + 2), jnp.float32)],
        compiler_params=pltpu.CompilerParams(
            dimension_semantics=("parallel",)),
    )(x2, s2, A, cb, W, sb)
    return out2.reshape(B, C_out, Fr_out, T)


# ---------------------------------------------------------------------------
# Pure-JAX reference (mirrors the PyTorch forward) for verification.
# ---------------------------------------------------------------------------
def reference_forward(x, skip, fusion_w, fusion_b, su_w, su_b,
                      lengths, original_lengths, band_cfg):
    C = x.shape[1]
    y = x + skip
    y_rep = jnp.concatenate([y, y], axis=1)
    conv = lax.conv_general_dilated(
        y_rep, fusion_w, window_strides=(1, 1), padding=((1, 1), (1, 1)),
        dimension_numbers=("NCHW", "OIHW", "NCHW")) \
        + fusion_b[None, :, None, None]
    a, g = conv[:, :C], conv[:, C:]
    fused = a * jax.nn.sigmoid(g)

    Fr = fused.shape[2]
    splits = [(0, lengths[0]),
              (lengths[0], lengths[0] + lengths[1]),
              (lengths[0] + lengths[1], Fr)]
    outs = []
    for i, (s0, s1) in enumerate(splits):
        k = band_cfg[i]["kernel"]
        s = band_cfg[i]["stride"]
        W = su_w[i]                                            # (Cin,Cout,k,1)
        bb = su_b[i]
        xb = fused[:, :, s0:s1, :]
        Wr = jnp.flip(W, axis=(2, 3)).transpose(1, 0, 2, 3)    # (Cout,Cin,k,1)
        out = lax.conv_general_dilated(
            xb, Wr, window_strides=(1, 1),
            padding=((k - 1, k - 1), (0, 0)), lhs_dilation=(s, 1),
            dimension_numbers=("NCHW", "OIHW", "NCHW")) \
            + bb[None, :, None, None]
        cur = out.shape[2]
        dist = abs(original_lengths[i] - cur) // 2
        outs.append(out[:, :, dist:dist + original_lengths[i], :])
    return jnp.concatenate(outs, axis=2)


if __name__ == "__main__":
    # Small but lane-dense shapes: T = 128 (time axis is large in SCNet),
    # B = 4 so the grid has enough steps to pipeline.
    B, C_in, C_out, Fr, T = 4, 4, 4, 16, 128
    band_cfg = [
        {"kernel": 4, "stride": 2},   # low band
        {"kernel": 4, "stride": 2},   # mid band
        {"kernel": 2, "stride": 1},   # high band
    ]
    lengths = [6, 5, 5]               # freq-band lengths at the current scale
    original_lengths = [12, 10, 6]    # freq-band lengths to restore

    key = jax.random.PRNGKey(0)
    keys = jax.random.split(key, 10)
    x = jax.random.normal(keys[0], (B, C_in, Fr, T), jnp.float32)
    skip = jax.random.normal(keys[1], (B, C_in, Fr, T), jnp.float32)

    # deterministic synthetic parameters (shapes per module __init__)
    fusion_w = 0.1 * jax.random.normal(keys[2], (2 * C_in, 2 * C_in, 3, 3),
                                       jnp.float32)
    fusion_b = 0.1 * jax.random.normal(keys[3], (2 * C_in,), jnp.float32)
    su_w = [0.1 * jax.random.normal(keys[4 + i],
                                    (C_in, C_out, band_cfg[i]["kernel"], 1),
                                    jnp.float32) for i in range(3)]
    su_b = [0.1 * jax.random.normal(keys[7 + i], (C_out,), jnp.float32)
            for i in range(3)]

    # Fold parameters ONCE (hoisted out of the forward path).
    params, Fr_out = prepare_decoder_params(
        fusion_w, fusion_b, su_w, su_b, lengths, original_lengths, band_cfg,
        C_in, C_out, Fr)

    out = decoder_block_pallas(x, skip, params["A"], params["cb"],
                               params["W"], params["sb"],
                               C_out=C_out, Fr_out=Fr_out)
    out = jax.block_until_ready(out)

    ref = reference_forward(x, skip, fusion_w, fusion_b, su_w, su_b,
                            lengths, original_lengths, band_cfg)
    # bf16 matmul operands (f32 accumulation) vs f32 reference.
    np.testing.assert_allclose(np.asarray(out), np.asarray(ref),
                               rtol=3e-2, atol=3e-2)
    print("KERNEL_OK")
</pallas_src>

<mosaic_0001>
module attributes {stable_mosaic.version = 11 : i64} {
  func.func @_decoder_kernel(%arg0: i32, %arg1: memref<1x64x128xf32, #tpu.memory_space<vmem>>, %arg2: memref<1x64x128xf32, #tpu.memory_space<vmem>>, %arg3: memref<3x128x64xbf16, #tpu.memory_space<vmem>>, %arg4: memref<128x1xf32, #tpu.memory_space<vmem>>, %arg5: memref<112x64xbf16, #tpu.memory_space<vmem>>, %arg6: memref<112x1xf32, #tpu.memory_space<vmem>>, %arg7: memref<1x112x128xf32, #tpu.memory_space<vmem>>, %arg8: memref<64x130xf32, #tpu.memory_space<vmem>>) attributes {dimension_semantics = [#tpu.dimension_semantics<parallel>], iteration_bounds = array<i64: 4>, scalar_prefetch = 0 : i64, scratch_operands = 1 : i64, tpu.core_type = #tpu.core_type<tc>, window_params = [{transform_indices = @transform_0, window_bounds = array<i64: 1, 64, 128>}, {transform_indices = @transform_1, window_bounds = array<i64: 1, 64, 128>}, {pipeline_mode = #tpu.pipeline_mode<synchronous>, transform_indices = @transform_2, window_bounds = array<i64: 3, 128, 64>}, {pipeline_mode = #tpu.pipeline_mode<synchronous>, transform_indices = @transform_3, window_bounds = array<i64: 128, 1>}, {pipeline_mode = #tpu.pipeline_mode<synchronous>, transform_indices = @transform_4, window_bounds = array<i64: 112, 64>}, {pipeline_mode = #tpu.pipeline_mode<synchronous>, transform_indices = @transform_5, window_bounds = array<i64: 112, 1>}, {transform_indices = @transform_6, window_bounds = array<i64: 1, 112, 128>}]} {
    %cst = arith.constant 0.000000e+00 : f32
    %0 = vector.broadcast %cst : f32 to vector<64x130xf32>
    %c0 = arith.constant 0 : index
    %c0_0 = arith.constant 0 : index
    %1 = vector.load %arg8[%c0, %c0_0] : memref<64x130xf32, #tpu.memory_space<vmem>>, vector<64x130xf32>
    tpu.vector_store %arg8[%c0, %c0_0], %0 {strides = array<i32>} : memref<64x130xf32, #tpu.memory_space<vmem>>, vector<64x130xf32>,
    %c0_1 = arith.constant 0 : index
    %c0_2 = arith.constant 0 : index
    %c0_3 = arith.constant 0 : index
    %2 = vector.load %arg1[%c0_1, %c0_2, %c0_3] : memref<1x64x128xf32, #tpu.memory_space<vmem>>, vector<1x64x128xf32>
    %3 = vector.shape_cast %2 : vector<1x64x128xf32> to vector<64x128xf32>
    %c0_4 = arith.constant 0 : index
    %c0_5 = arith.constant 0 : index
    %c0_6 = arith.constant 0 : index
    %4 = vector.load %arg2[%c0_4, %c0_5, %c0_6] : memref<1x64x128xf32, #tpu.memory_space<vmem>>, vector<1x64x128xf32>
    %5 = vector.shape_cast %4 : vector<1x64x128xf32> to vector<64x128xf32>
    %6 = arith.addf %3, %5 : vector<64x128xf32>
    %c0_7 = arith.constant 0 : index
    %c1 = arith.constant 1 : index
    %7 = vector.load %arg8[%c0_7, %c1] : memref<64x130xf32, #tpu.memory_space<vmem>>, vector<64x128xf32>
    tpu.vector_store %arg8[%c0_7, %c1], %6 {strides = array<i32>} : memref<64x130xf32, #tpu.memory_space<vmem>>, vector<64x128xf32>,
    %cst_8 = arith.constant 0.000000e+00 : f32
    %8 = vector.broadcast %cst_8 : f32 to vector<128x128xf32>
    %c0_9 = arith.constant 0 : index
    %c0_10 = arith.constant 0 : index
    %c0_11 = arith.constant 0 : index
    %9 = vector.load %arg3[%c0_9, %c0_10, %c0_11] : memref<3x128x64xbf16, #tpu.memory_space<vmem>>, vector<1x128x64xbf16>
    %10 = vector.shape_cast %9 : vector<1x128x64xbf16> to vector<128x64xbf16>
    %c0_12 = arith.constant 0 : index
    %c0_13 = arith.constant 0 : index
    %11 = vector.load %arg8[%c0_12, %c0_13] : memref<64x130xf32, #tpu.memory_space<vmem>>, vector<64x128xf32>
    %12 = arith.truncf %11 : vector<64x128xf32> to vector<64x128xbf16>
    %cst_14 = arith.constant dense<0.000000e+00> : vector<128x128xf32>
    %13 = tpu.matmul %10, %12, %cst_14 {dimension_numbers = #tpu.dot_dimension_numbers<[1], [0], [0], [1], [0, 0, 1, 1], [], []>} : vector<128x64xbf16>, vector<64x128xbf16>, vector<128x128xf32> -> vector<128x128xf32>
    %14 = arith.addf %8, %13 : vector<128x128xf32>
    %c1_15 = arith.constant 1 : index
    %c0_16 = arith.constant 0 : index
    %c0_17 = arith.constant 0 : index
    %15 = vector.load %arg3[%c1_15, %c0_16, %c0_17] : memref<3x128x64xbf16, #tpu.memory_space<vmem>>, vector<1x128x64xbf16>
    %16 = vector.shape_cast %15 : vector<1x128x64xbf16> to vector<128x64xbf16>
    %c0_18 = arith.constant 0 : index
    %c1_19 = arith.constant 1 : index
    %17 = vector.load %arg8[%c0_18, %c1_19] : memref<64x130xf32, #tpu.memory_space<vmem>>, vector<64x128xf32>
    %18 = arith.truncf %17 : vector<64x128xf32> to vector<64x128xbf16>
    %cst_20 = arith.constant dense<0.000000e+00> : vector<128x128xf32>
    %19 = tpu.matmul %16, %18, %cst_20 {dimension_numbers = #tpu.dot_dimension_numbers<[1], [0], [0], [1], [0, 0, 1, 1], [], []>} : vector<128x64xbf16>, vector<64x128xbf16>, vector<128x128xf32> -> vector<128x128xf32>
    %20 = arith.addf %14, %19 : vector<128x128xf32>
    %c2 = arith.constant 2 : index
    %c0_21 = arith.constant 0 : index
    %c0_22 = arith.constant 0 : index
    %21 = vector.load %arg3[%c2, %c0_21, %c0_22] : memref<3x128x64xbf16, #tpu.memory_space<vmem>>, vector<1x128x64xbf16>
    %22 = vector.shape_cast %21 : vector<1x128x64xbf16> to vector<128x64xbf16>
    %c0_23 = arith.constant 0 : index
    %c2_24 = arith.constant 2 : index
    %23 = vector.load %arg8[%c0_23, %c2_24] : memref<64x130xf32, #tpu.memory_space<vmem>>, vector<64x128xf32>
    %24 = arith.truncf %23 : vector<64x128xf32> to vector<64x128xbf16>
    %cst_25 = arith.constant dense<0.000000e+00> : vector<128x128xf32>
    %25 = tpu.matmul %22, %24, %cst_25 {dimension_numbers = #tpu.dot_dimension_numbers<[1], [0], [0], [1], [0, 0, 1, 1], [], []>} : vector<128x64xbf16>, vector<64x128xbf16>, vector<128x128xf32> -> vector<128x128xf32>
    %26 = arith.addf %20, %25 : vector<128x128xf32>
    %c0_26 = arith.constant 0 : index
    %c0_27 = arith.constant 0 : index
    %27 = vector.load %arg4[%c0_26, %c0_27] : memref<128x1xf32, #tpu.memory_space<vmem>>, vector<128x1xf32>
    %28 = vector.broadcast %27 : vector<128x1xf32> to vector<128x128xf32>
    %29 = arith.addf %26, %28 : vector<128x128xf32>
    %30 = vector.extract_strided_slice %29 {offsets = [0, 0], sizes = [64, 128], strides = [1, 1]} : vector<128x128xf32> to vector<64x128xf32>
    %31 = vector.extract_strided_slice %29 {offsets = [64, 0], sizes = [64, 128], strides = [1, 1]} : vector<128x128xf32> to vector<64x128xf32>
    %32 = arith.negf %31 : vector<64x128xf32>
    %33 = math.exp %32 : vector<64x128xf32>
    %cst_28 = arith.constant 1.000000e+00 : f32
    %34 = vector.broadcast %cst_28 : f32 to vector<64x128xf32>
    %35 = arith.addf %34, %33 : vector<64x128xf32>
    %36 = arith.divf %34, %35 : vector<64x128xf32>
    %37 = arith.mulf %30, %36 : vector<64x128xf32>
    %c0_29 = arith.constant 0 : index
    %c0_30 = arith.constant 0 : index
    %38 = vector.load %arg5[%c0_29, %c0_30] : memref<112x64xbf16, #tpu.memory_space<vmem>>, vector<112x64xbf16>
    %39 = arith.truncf %37 : vector<64x128xf32> to vector<64x128xbf16>
    %cst_31 = arith.constant dense<0.000000e+00> : vector<112x128xf32>
    %40 = tpu.matmul %38, %39, %cst_31 {dimension_numbers = #tpu.dot_dimension_numbers<[1], [0], [0], [1], [0, 0, 1, 1], [], []>} : vector<112x64xbf16>, vector<64x128xbf16>, vector<112x128xf32> -> vector<112x128xf32>
    %c0_32 = arith.constant 0 : index
    %c0_33 = arith.constant 0 : index
    %41 = vector.load %arg6[%c0_32, %c0_33] : memref<112x1xf32, #tpu.memory_space<vmem>>, vector<112x1xf32>
    %42 = vector.broadcast %41 : vector<112x1xf32> to vector<112x128xf32>
    %43 = arith.addf %40, %42 : vector<112x128xf32>
    %c0_34 = arith.constant 0 : index
    %c0_35 = arith.constant 0 : index
    %c0_36 = arith.constant 0 : index
    %44 = vector.load %arg7[%c0_34, %c0_35, %c0_36] : memref<1x112x128xf32, #tpu.memory_space<vmem>>, vector<1x112x128xf32>
    %45 = vector.shape_cast %44 : vector<1x112x128xf32> to vector<112x128xf32>
    %46 = vector.shape_cast %43 : vector<112x128xf32> to vector<1x112x128xf32>
    tpu.vector_store %arg7[%c0_34, %c0_35, %c0_36], %46 {strides = array<i32>} : memref<1x112x128xf32, #tpu.memory_space<vmem>>, vector<1x112x128xf32>,
    return
  }
  func.func @transform_0(%arg0: i32) -> (i32, i32, i32) {
    %c0_i32 = arith.constant 0 : i32
    %c0_i32_0 = arith.constant 0 : i32
    %c0_i32_1 = arith.constant 0 : i32
    return %arg0, %c0_i32, %c0_i32_0 : i32, i32, i32
  }
  func.func @transform_1(%arg0: i32) -> (i32, i32, i32) {
    %c0_i32 = arith.constant 0 : i32
    %c0_i32_0 = arith.constant 0 : i32
    %c0_i32_1 = arith.constant 0 : i32
    return %arg0, %c0_i32, %c0_i32_0 : i32, i32, i32
  }
  func.func @transform_2(%arg0: i32) -> (i32, i32, i32) {
    %c0_i32 = arith.constant 0 : i32
    %c0_i32_0 = arith.constant 0 : i32
    %c0_i32_1 = arith.constant 0 : i32
    %c0_i32_2 = arith.constant 0 : i32
    return %c0_i32, %c0_i32_0, %c0_i32_1 : i32, i32, i32
  }
  func.func @transform_3(%arg0: i32) -> (i32, i32) {
    %c0_i32 = arith.constant 0 : i32
    %c0_i32_0 = arith.constant 0 : i32
    %c0_i32_1 = arith.constant 0 : i32
    return %c0_i32, %c0_i32_0 : i32, i32
  }
  func.func @transform_4(%arg0: i32) -> (i32, i32) {
    %c0_i32 = arith.constant 0 : i32
    %c0_i32_0 = arith.constant 0 : i32
    %c0_i32_1 = arith.constant 0 : i32
    return %c0_i32, %c0_i32_0 : i32, i32
  }
  func.func @transform_5(%arg0: i32) -> (i32, i32) {
    %c0_i32 = arith.constant 0 : i32
    %c0_i32_0 = arith.constant 0 : i32
    %c0_i32_1 = arith.constant 0 : i32
    return %c0_i32, %c0_i32_0 : i32, i32
  }
  func.func @transform_6(%arg0: i32) -> (i32, i32, i32) {
    %c0_i32 = arith.constant 0 : i32
    %c0_i32_0 = arith.constant 0 : i32
    %c0_i32_1 = arith.constant 0 : i32
    return %arg0, %c0_i32, %c0_i32_0 : i32, i32, i32
  }
}

</mosaic_0001>

<bundles_post_ra>
// kernel: decoder_block_pallas.1
= control target key start
LH: loop header
LB: loop body
LE: loop exit
PB: predicated region body
PF: predicated region fallthrough
CT: control target
= control target key end

     0   :  { %11 = vsyncpa [#allocation4], 0  ;;  %s2379_s0 = inlined_call_operand.vmem [shape: f32[4,64,128], index: 0, kind: input, shape index: {}]   ;;  %s2380_s1 = inlined_call_operand.hbm [shape: f32[4,64,128], index: 1, kind: input, shape index: {}]   ;;  %s2381_s2 = inlined_call_operand.vmem [shape: bf16[3,128,64], index: 2, kind: input, shape index: {}]   ;;  %s2382_s3 = inlined_call_operand.vmem [shape: f32[128,1], index: 3, kind: input, shape index: {}]   ;;  %s2383_s4 = inlined_call_operand.vmem [shape: bf16[112,64], index: 4, kind: input, shape index: {}]   ;;  %s2384_s5 = inlined_call_operand.vmem [shape: f32[112,1], index: 5, kind: input, shape index: {}]   ;;  %s2385_s6 = inlined_call_operand.vmem [shape: f32[4,112,128], index: 6, kind: output, shape index: {}]  }
   0x1   :  { %13 = vsyncpa [#allocation4 + $0x1], 0  ;;  %s1872_s21 = smov 0   ;;  %s1874_s22 = smov 0  }
   0x2   :  { %s1876_s23 = smov 0   ;;  %s1878_s24 = smov 0  }
   0x3 LB: > { %s1891_s25 = sadd.s32 4294967295, %s1828_s24   ;;  %s1894_s26 = sadd.s32 1, %s1828_s24   ;;  %s1828_s24 = sphi %s1878_s24, %s2396_s24   ;;  %s1824_s23 = sphi %s1876_s23, %s2395_s23   ;;  %s1820_s22 = sphi %s1874_s22, %s2394_s22   ;;  %s1816_s21 = sphi %s1872_s21, %s2393_s21  }
   0x4   : > { %s49_s27 = ssub.s32 %s1828_s24, %s1894_s26  ;;  %s52_s28 = sadd.s32 1, %s1824_s23 }
   0x5   : > { %p50_p0 = scmp.eq.s32.totalorder %s49_s27, 0  ;;  %p59_p1 = scmp.ne.s32.totalorder %s1824_s23, %s1820_s22 }
   0x6   : > { %p60_p2 = scmp.eq.s32.totalorder %s1828_s24, 0  ;;  %p65_p3 = scmp.ne.s32.totalorder %s1820_s22, %s1816_s21 }
   0x7   : > { %s1904_s29 = scalar_select %p50_p0, %s1824_s23, %s52_s28  }
   0x8   : > { %p1906_p4 = por %p60_p2, %p59_p1  ;;  %p66_p5 = scmp.eq.s32.totalorder %s1891_s25, 0 }
   0x9   : > { %p1689_p6 = scmp.lt.s32.totalorder %s1828_s24, 4  ;;  %s219_s8 = sand.u32 1, %s1824_s23  }
   0xa   : > { %p1912_p7 = por %p66_p5, %p65_p3  ;;  %s1444_s9 = sshll.u32 %s219_s8, 6 }
   0xb   : > { %s1649_s10 = sshll.u32 %s1828_s24, 6  ;;  %s223_s14 = scalar_lea.vmem [#allocation3], %s1444_s9 }
   0xc   : > { %s228_s13 = scalar_lea.hbm %s2380_s1, %s1649_s10  ;;  %s231_s15 = sshll.u32 %s223_s14, 4  ;;  %s232_s15 = int_to_ptr.vmem [resolvable:$true] %s231_s15 }
   0xd   : > { %s229_s16 = sshll.u32 %s228_s13, 4  ;;  %p1923_p8 = pnand %p1689_p6, %p1906_p4  ;;  %s230_s16 = int_to_ptr.hbm [resolvable:$true] %s229_s16 }
   0xe   : > { %p1447_p9 = scmp.ge.s32.totalorder %s1828_s24, 1  ;;  %s220_s18 = scalar_lea.sflag [#allocation4], %s219_s8 }
   0xf   : > { %s1764_s19 = sshra.s32 %s230_s16, 4  ;;  %p1768_p11 = pneg %p1923_p8  ;;  %s1765_s19 = int_to_ptr.hbm [resolvable:$true] %s1764_s19 }
  0x10   : > { %s1766_s20 = scalar_lea.hbm %s1765_s19, 64  ;;  %s1771_s28 = scalar_lea.hbm %s2380_s1, 256 }
  0x11   : > { %p1767_p10 = scmp.ne.s32.totalorder %s1765_s19, %s1766_s20  ;;  %p1772_p0 = scmp.lt.s32.totalorder %s1765_s19, %s2380_s1 }
  0x12   : > { %p1773_p1 = scmp.lt.s32.totalorder %s1771_s28, %s1766_s20 }
  0x13   : > { %p1769_p12 = pnand %p1768_p11, %p1767_p10 }
  0x14   : > { %p1774_p2 = por %p1773_p1, %p1772_p0 }
  0x15   : > { %p1770_p13 = pneg %p1769_p12 }
  0x17   : > { %p1775_p3 = pnand %p1774_p2, %p1770_p13 }
  0x19   : > { %1778 = shalt.err (!%p1775_p3)
}
  0x1a   : > { %s1830_s8 = smov 128   ;;  %s1831_s10 = smov 8  }
  0x1b   : > { %1688 = dma.hbm_to_vmem [thread:$0]  (!%p1923_p8), %s230_s16, 1024, %s232_s15, %s220_s18, %s1830_s8, %s1830_s8, %s1831_s10  }
  0x1c   : > { %p239_p4 = scmp.lt.s32.totalorder %s1828_s24, 5 }
  0x1e   : > { %p240_p5 = pnand %p1447_p9, %p239_p4 }
  0x1f   : > { %s245_s11 = sand.u32 (!%p240_p5), 1, %s1820_s22  }
  0x20   : > { %243 = sbr.rel (%p240_p5) target bundleno = 873 (0x369), region = 44  ;;  %s1448_s12 = sshll.u32 (!%p240_p5), %s245_s11, 6 }
  0x21   : > { %s246_s13 = scalar_lea.sflag (!%p240_p5), [#allocation4], %s245_s11  ;;  %s1942_s14 = scalar_lea.vmem (!%p240_p5), [#allocation3], %s1448_s12 }
  0x25   : > { %1811 = dma.done.wait (%p1912_p7), %s246_s13, 1024  }
  0x26   : > { %1813 = vsyncadd (%p1912_p7), %s246_s13, 4294966272  ;;  %p284_p6 = scmp.lt.s32.totalorder %s1891_s25, 3  ;;  %vm296_vm0 = vcmask 15360   ;;  %v1832_v0 = vmov 0.0   ;;  %v326_v2 = vld [vmem:[%s1942_s14 + $0x30] sm:$0xff]  ;;  %v324_v5 = vld [vmem:[%s1942_s14 + $0x20] sm:$0xff] }
  0x27   : > { %308 = vst [vmem:[#allocation2 + $0x60] sm:$0xff] %v1832_v0  ;;  %s1833_s17 = smov 1   ;;  %v322_v8 = vld [vmem:[%s1942_s14 + $0x10] sm:$0xff]  ;;  %v327_v10 = vld [vmem:[%s1942_s14 + $0x38] sm:$0xff]  ;;  %v325_v13 = vld [vmem:[%s1942_s14 + $0x28] sm:$0xff]  ;;  %vm368_vm1 = vcmask 1047560  }
  0x28   : > { %s2398_s25 = smov (!%p284_p6, %s1891_s25), 3  ;;  %309 = vst.msk [vmem:[#allocation2 + $0x68] sm:$0xff] %vm296_vm0, %v1832_v0  ;;  %v323_v16 = vld [vmem:[%s1942_s14 + $0x18] sm:$0xff]  ;;  %v320_v20 = vld [vmem:[%s1942_s14] sm:$0xff]  ;;  %v321_v22 = vld [vmem:[%s1942_s14 + $0x8] sm:$0xff]  ;;  %vm370_vm2 = vcmask 7168  }
  0x29   : > { %295 = vst [vmem:[#allocation2] sm:$0xff] %v1832_v0  ;;  %s1650_s24 = sshll.u32 %s2398_s25, 6  ;;  %s1834_s18 = smov 127   ;;  %v1836_v58 = vmov 0   ;;  %v888_v60 = vld [vmem:[%s2382_s3 + $0x70] sm:$0xff]  ;;  %v889_v61 = vld [vmem:[%s2382_s3 + $0x78] sm:$0xff] }
  0x2a   : > { %297 = vst.msk [vmem:[#allocation2 + $0x8] sm:$0xff] %vm296_vm0, %v1832_v0  ;;  %s1958_s16 = scalar_lea.vmem %s2379_s0, %s1650_s24  ;;  %s1835_s19 = smov 126   ;;  %1730 = vset.pattern.permute.xlu1 %v1836_v58  ;;  %1729 = vset.pattern.permute.xlu0 %v1836_v58  ;;  %vm507_vm3 = vcmask 1039360   ;;  %vm776_vm4 = vcmask 1031168   ;;  %v885_v62 = vld [vmem:[%s2382_s3 + $0x58] sm:$0xff]  ;;  %vm516_vm5 = vcmask 523264  }
  0x2b   : > { %298 = vst [vmem:[#allocation2 + $0x10] sm:$0xff] %v1832_v0  ;;  %v318_v1 = vld [vmem:[%s1958_s16 + $0x30] sm:$0xff]  ;;  %v316_v3 = vld [vmem:[%s1958_s16 + $0x20] sm:$0xff]  ;;  %v319_v9 = vld [vmem:[%s1958_s16 + $0x38] sm:$0xff]  ;;  %1731 = vset.pattern.permute.xlu2 %v1836_v58  ;;  %s1682_s11 = smul.u32 112, %s2398_s25 }
  0x2c   : > { %299 = vst.msk [vmem:[#allocation2 + $0x18] sm:$0xff] %vm296_vm0, %v1832_v0  ;;  %v334_v4 = vadd.f32 %v326_v2, %v318_v1  ;;  %v332_v6 = vadd.f32 %v324_v5, %v316_v3  ;;  %v314_v7 = vld [vmem:[%s1958_s16 + $0x10] sm:$0xff]  ;;  %v317_v12 = vld [vmem:[%s1958_s16 + $0x28] sm:$0xff]  ;;  %v335_v14 = vadd.f32 %v327_v10, %v319_v9  ;;  %v315_v15 = vld [vmem:[%s1958_s16 + $0x18] sm:$0xff] }
  0x2d   : > { %300 = vst [vmem:[#allocation2 + $0x20] sm:$0xff] %v1832_v0  ;;  %v330_v11 = vadd.f32 %v322_v8, %v314_v7  ;;  %v333_v17 = vadd.f32 %v325_v13, %v317_v12  ;;  %v331_v18 = vadd.f32 %v323_v16, %v315_v15  ;;  %v312_v19 = vld [vmem:[%s1958_s16] sm:$0xff]  ;;  %v313_v21 = vld [vmem:[%s1958_s16 + $0x8] sm:$0xff]  ;;  %v1171_v58 = vld [vmem:[%s2384_s5 + $0x38] sm:$0xff]  ;;  %s2350_s14 = scalar_lea.vmem %s2385_s6, %s1682_s11 }
  0x2e   : > { %301 = vst.msk [vmem:[#allocation2 + $0x28] sm:$0xff] %vm296_vm0, %v1832_v0  ;;  %356 = vrot.lane.b32.xlu0 %v334_v4, %s1833_s17  ;;  %352 = vrot.lane.b32.xlu1 %v332_v6, %s1833_s17  ;;  %v328_v23 = vadd.f32 %v320_v20, %v312_v19  ;;  %v329_v24 = vadd.f32 %v321_v22, %v313_v21  ;;  %v887_v2 = vld [vmem:[%s2382_s3 + $0x68] sm:$0xff]  ;;  %v1651_v3 = vld [vmem:[%s2381_s2] sm:$0xff] }
  0x2f   : > { %302 = vst [vmem:[#allocation2 + $0x30] sm:$0xff] %v1832_v0  ;;  %348 = vrot.lane.b32.xlu2 %v330_v11, %s1833_s17  ;;  %v880_v6 = vld [vmem:[%s2382_s3 + $0x30] sm:$0xff]  ;;  %v882_v8 = vld [vmem:[%s2382_s3 + $0x40] sm:$0xff]  ;;  %v879_v12 = vld [vmem:[%s2382_s3 + $0x28] sm:$0xff] }
  0x30   : > { %303 = vst.msk [vmem:[#allocation2 + $0x38] sm:$0xff] %vm296_vm0, %v1832_v0  ;;  %v1652_v15 = vld [vmem:[%s2381_s2 + $0x8] sm:$0xff]  ;;  %v874_v20 = vld [vmem:[%s2382_s3] sm:$0xff]  ;;  %v876_v22 = vld [vmem:[%s2382_s3 + $0x10] sm:$0xff] }
  0x31   : > { %304 = vst [vmem:[#allocation2 + $0x40] sm:$0xff] %v1832_v0 }
  0x32   : > { %305 = vst.msk [vmem:[#allocation2 + $0x48] sm:$0xff] %vm296_vm0, %v1832_v0 }
  0x33   : > { %306 = vst [vmem:[#allocation2 + $0x50] sm:$0xff] %v1832_v0 }
  0x34   : > { %307 = vst.msk [vmem:[#allocation2 + $0x58] sm:$0xff] %vm296_vm0, %v1832_v0 }
  0x35   : > { %310 = vst [vmem:[#allocation2 + $0x70] sm:$0xff] %v1832_v0 }
  0x36   : > { %311 = vst.msk [vmem:[#allocation2 + $0x78] sm:$0xff] %vm296_vm0, %v1832_v0  ;;  %358 = vrot.lane.b32.xlu0 %v335_v14, %s1833_s17  ;;  %354 = vrot.lane.b32.xlu1 %v333_v17, %s1833_s17  ;;  %v881_v14 = vld [vmem:[%s2382_s3 + $0x38] sm:$0xff] }
  0x37   : > { %350 = vrot.lane.b32.xlu2 %v331_v18, %s1833_s17 }
  0x3e   : > { %344 = vrot.lane.b32.xlu0 %v328_v23, %s1833_s17  ;;  %346 = vrot.lane.b32.xlu1 %v329_v24, %s1833_s17 }
  0x89   : > { %v349_v25 = vpop.permute.xlu2 %348 }
  0x8a   : > { %374 = vst.msk [vmem:[#allocation2 + $0x20] sm:$0xff] %vm368_vm1, %v349_v25 }
  0x8b   : > { %375 = vst.msk [vmem:[#allocation2 + $0x28] sm:$0xff] %vm370_vm2, %v349_v25 }
  0x91   : > { %v351_v26 = vpop.permute.xlu2 %350  ;;  %v404_v41 = vld [vmem:[#allocation2 + $0x20] sm:$0xff] }
  0x92   : > { %376 = vst.msk [vmem:[#allocation2 + $0x30] sm:$0xff] %vm368_vm1, %v351_v26  ;;  %v433_v51 = vld [vmem:[#allocation2 + $0x28] sm:$0xff] }
  0x93   : > { %377 = vst.msk [vmem:[#allocation2 + $0x38] sm:$0xff] %vm370_vm2, %v351_v26 }
  0x99   : > { %v405_v42 = vld [vmem:[#allocation2 + $0x30] sm:$0xff] }
  0x9a   : > { %v411_v46 = vpack.c.bf16 %v405_v42, %v404_v41  ;;  %v434_v52 = vld [vmem:[#allocation2 + $0x38] sm:$0xff]  ;;  %v1655_v41 = vld [vmem:[%s2381_s2 + $0x20] sm:$0xff]  ;;  %v1661_v42 = vld [vmem:[%s2381_s2 + $0x50] sm:$0xff] }
  0x9b   : > { %v440_v53 = vpack.c.bf16 %v434_v52, %v433_v51  ;;  %v1165_v51 = vld [vmem:[%s2384_s5 + $0x8] sm:$0xff]  ;;  %v1166_v52 = vld [vmem:[%s2384_s5 + $0x10] sm:$0xff] }
  0xa0   : > { %v357_v27 = vpop.permute.xlu0 %356  ;;  %v353_v28 = vpop.permute.xlu1 %352 }
  0xa1   : > { %382 = vst.msk [vmem:[#allocation2 + $0x60] sm:$0xff] %vm368_vm1, %v357_v27 }
  0xa2   : > { %383 = vst.msk [vmem:[#allocation2 + $0x68] sm:$0xff] %vm370_vm2, %v357_v27  ;;  %v875_v27 = vld [vmem:[%s2382_s3 + $0x8] sm:$0xff] }
  0xa3   : > { %378 = vst.msk [vmem:[#allocation2 + $0x40] sm:$0xff] %vm368_vm1, %v353_v28 }
  0xa4   : > { %379 = vst.msk [vmem:[#allocation2 + $0x48] sm:$0xff] %vm370_vm2, %v353_v28  ;;  %v1653_v28 = vld [vmem:[%s2381_s2 + $0x10] sm:$0xff] }
  0xa8   : > { %v359_v29 = vpop.permute.xlu0 %358  ;;  %v355_v30 = vpop.permute.xlu1 %354  ;;  %v408_v31 = vld [vmem:[#allocation2 + $0x60] sm:$0xff] }
  0xa9   : > { %384 = vst.msk [vmem:[#allocation2 + $0x70] sm:$0xff] %vm368_vm1, %v359_v29  ;;  %v437_v34 = vld [vmem:[#allocation2 + $0x68] sm:$0xff] }
  0xaa   : > { %385 = vst.msk [vmem:[#allocation2 + $0x78] sm:$0xff] %vm370_vm2, %v359_v29  ;;  %v406_v39 = vld [vmem:[#allocation2 + $0x40] sm:$0xff] }
  0xab   : > { %380 = vst.msk [vmem:[#allocation2 + $0x50] sm:$0xff] %vm368_vm1, %v355_v30  ;;  %v435_v44 = vld [vmem:[#allocation2 + $0x48] sm:$0xff] }
  0xac   : > { %381 = vst.msk [vmem:[#allocation2 + $0x58] sm:$0xff] %vm370_vm2, %v355_v30 }
  0xb0   : > { %v409_v32 = vld [vmem:[#allocation2 + $0x70] sm:$0xff]  ;;  %v345_v33 = vpop.permute.xlu0 %344  ;;  %v347_v37 = vpop.permute.xlu1 %346 }
  0xb1   : > { %v438_v35 = vld [vmem:[#allocation2 + $0x78] sm:$0xff]  ;;  %v413_v36 = vpack.c.bf16 %v409_v32, %v408_v31  ;;  %369 = vst.msk [vmem:[#allocation2] sm:$0xff] %vm368_vm1, %v345_v33  ;;  %v1659_v31 = vld [vmem:[%s2381_s2 + $0x40] sm:$0xff] }
  0xb2   : > { %v442_v38 = vpack.c.bf16 %v438_v35, %v437_v34  ;;  %372 = vst.msk [vmem:[#allocation2 + $0x10] sm:$0xff] %vm368_vm1, %v347_v37  ;;  %v407_v40 = vld [vmem:[#allocation2 + $0x50] sm:$0xff]  ;;  %v886_v34 = vld [vmem:[%s2382_s3 + $0x60] sm:$0xff] }
  0xb3   : > { %503 = vrot.lane.b32.xlu1 %v413_v36, %s1834_s18  ;;  %772 = vrot.lane.b32.xlu2 %v413_v36, %s1835_s19  ;;  %373 = vst.msk [vmem:[#allocation2 + $0x18] sm:$0xff] %vm370_vm2, %v347_v37  ;;  %v412_v43 = vpack.c.bf16 %v407_v40, %v406_v39  ;;  %v436_v45 = vld [vmem:[#allocation2 + $0x58] sm:$0xff]  ;;  %v884_v35 = vld [vmem:[%s2382_s3 + $0x50] sm:$0xff]  ;;  %v1660_v37 = vld [vmem:[%s2381_s2 + $0x48] sm:$0xff] }
  0xb4   : > { %774 = vrot.lane.b32.xlu0 %v442_v38, %s1835_s19  ;;  %658 = vmatpush.bf16.msra.mxu1 %v413_v36  ;;  %371 = vst.msk [vmem:[#allocation2 + $0x8] sm:$0xff] %vm370_vm2, %v345_v33  ;;  %v441_v47 = vpack.c.bf16 %v436_v45, %v435_v44  ;;  %v1667_v33 = vld [vmem:[%s2381_s2 + $0x80] sm:$0xff]  ;;  %v1654_v36 = vld [vmem:[%s2381_s2 + $0x18] sm:$0xff]  ;;  %v883_v39 = vld [vmem:[%s2382_s3 + $0x48] sm:$0xff] }
  0xb5   : > { %v878_v40 = vld [vmem:[%s2382_s3 + $0x20] sm:$0xff]  ;;  %v877_v44 = vld [vmem:[%s2382_s3 + $0x18] sm:$0xff]  ;;  %v1656_v45 = vld [vmem:[%s2381_s2 + $0x28] sm:$0xff] }
  0xb8   : > { %659 = vmatpush.bf16.msra.mxu1 %v412_v43  ;;  %v402_v48 = vld [vmem:[#allocation2] sm:$0xff] }
  0xb9   : > { %v403_v49 = vld [vmem:[#allocation2 + $0x10] sm:$0xff] }
  0xba   : > { %v410_v50 = vpack.c.bf16 %v403_v49, %v402_v48  ;;  %v432_v55 = vld [vmem:[#allocation2 + $0x18] sm:$0xff]  ;;  %v1657_v48 = vld [vmem:[%s2381_s2 + $0x30] sm:$0xff]  ;;  %v1663_v49 = vld [vmem:[%s2381_s2 + $0x60] sm:$0xff] }
  0xbb   : > { %505 = vrot.lane.b32.xlu2 %v442_v38, %s1834_s18  ;;  %770 = vrot.lane.b32.xlu1 %v441_v47, %s1835_s19  ;;  %v431_v54 = vld [vmem:[#allocation2 + $0x8] sm:$0xff] }
  0xbc   : > { %768 = vrot.lane.b32.xlu0 %v412_v43, %s1835_s19  ;;  %660 = vmatpush.bf16.msra.mxu1 %v411_v46  ;;  %v439_v56 = vpack.c.bf16 %v432_v55, %v431_v54  ;;  %v1668_v38 = vld [vmem:[%s2381_s2 + $0x88] sm:$0xff] }
  0xbd   : > { %v1664_v54 = vld [vmem:[%s2381_s2 + $0x68] sm:$0xff] }
  0xbe   : > { %v1672_v55 = vld [vmem:[%s2381_s2 + $0xa8] sm:$0xff] }
  0xc0   : > { %661 = vmatpush.bf16.msra.mxu1 %v410_v50 }
  0xc3   : > { %499 = vrot.lane.b32.xlu2 %v412_v43, %s1834_s18  ;;  %764 = vrot.lane.b32.xlu1 %v411_v46, %s1835_s19  ;;  %v1669_v43 = vld [vmem:[%s2381_s2 + $0x90] sm:$0xff] }
  0xc4   : > { %501 = vrot.lane.b32.xlu0 %v441_v47, %s1834_s18  ;;  %1540 = vmatmul.msk.bf16.vlgmr.msra.gmra.mxu1 %vm516_vm5, %v1651_v3  ;;  %v1670_v47 = vld [vmem:[%s2381_s2 + $0x98] sm:$0xff]  ;;  %v1177_v3 = vld [vmem:[%s2384_s5 + $0x68] sm:$0xff] }
  0xcb   : > { %766 = vrot.lane.b32.xlu2 %v440_v53, %s1835_s19  ;;  %497 = vrot.lane.b32.xlu1 %v440_v53, %s1834_s18  ;;  %v1658_v53 = vld [vmem:[%s2381_s2 + $0x38] sm:$0xff] }
  0xcc   : > { %495 = vrot.lane.b32.xlu0 %v411_v46, %s1834_s18  ;;  %v1662_v46 = vld [vmem:[%s2381_s2 + $0x58] sm:$0xff] }
  0xd3   : > { %491 = vrot.lane.b32.xlu1 %v410_v50, %s1834_s18  ;;  %760 = vrot.lane.b32.xlu2 %v410_v50, %s1835_s19  ;;  %v1671_v50 = vld [vmem:[%s2381_s2 + $0xa0] sm:$0xff] }
  0xd4   : > { %762 = vrot.lane.b32.xlu0 %v439_v56, %s1835_s19  ;;  %1541 = vmatmul.msk.bf16.gmra.mxu1 %vm516_vm5, %v1652_v15 }
  0xdb   : > { %493 = vrot.lane.b32.xlu2 %v439_v56, %s1834_s18  ;;  %967 = vperm.xlu1 %1730, %v889_v61   ;;  %v1168_v56 = vld [vmem:[%s2384_s5 + $0x20] sm:$0xff] }
  0xdc   : > { %962 = vperm.xlu0 %1729, %v888_v60   ;;  %v1673_v60 = vld [vmem:[%s2381_s2 + $0xb0] sm:$0xff]  ;;  %v1172_v61 = vld [vmem:[%s2384_s5 + $0x40] sm:$0xff] }
  0xe3   : > { %957 = vperm.xlu1 %1730, %v887_v2   ;;  %952 = vperm.xlu2 %1731, %v886_v34   ;;  %v1167_v2 = vld [vmem:[%s2384_s5 + $0x18] sm:$0xff] }
  0xe4   : > { %947 = vperm.xlu0 %1729, %v885_v62   ;;  %1542 = vmatmul.msk.bf16.gmra.mxu1 %vm516_vm5, %v1653_v28  ;;  %v1164_v62 = vld [vmem:[%s2384_s5] sm:$0xff] }
  0xeb   : > { %932 = vperm.xlu1 %1730, %v882_v8   ;;  %942 = vperm.xlu2 %1731, %v884_v35   ;;  %v1173_v8 = vld [vmem:[%s2384_s5 + $0x48] sm:$0xff] }
  0xec   : > { %922 = vperm.xlu0 %1729, %v880_v6  }
  0xf3   : > { %927 = vperm.xlu1 %1730, %v881_v14   ;;  %937 = vperm.xlu2 %1731, %v883_v39  }
  0xf4   : > { %917 = vperm.xlu0 %1729, %v879_v12   ;;  %1543 = vmatmul.msk.bf16.gmra.mxu1 %vm516_vm5, %v1654_v36  ;;  %v1176_v12 = vld [vmem:[%s2384_s5 + $0x60] sm:$0xff] }
  0xfb   : > { %902 = vperm.xlu1 %1730, %v876_v22   ;;  %912 = vperm.xlu2 %1731, %v878_v40  }
  0xfc   : > { %892 = vperm.xlu0 %1729, %v874_v20  }
 0x103   : > { %897 = vperm.xlu1 %1730, %v875_v27   ;;  %907 = vperm.xlu2 %1731, %v877_v44  }
 0x104   : > { %1544 = vmatmul.msk.bf16.gmra.mxu1 %vm516_vm5, %v1655_v41  ;;  %1185 = vperm.xlu0 %1729, %v1165_v51  }
 0x10b   : > { %1190 = vperm.xlu1 %1730, %v1166_v52   ;;  %1180 = vperm.xlu2 %1731, %v1164_v62  }
 0x10c   : > { %1200 = vperm.xlu0 %1729, %v1168_v56  }
 0x10d   : > { %v773_v57 = vpop.permute.xlu2 %772 }
 0x113   : > { %1195 = vperm.xlu2 %1731, %v1167_v2  }
 0x114   : > { %1545 = vmatmul.msk.bf16.gmra.mxu1 %vm516_vm5, %v1656_v45  ;;  %1215 = vperm.xlu0 %1729, %v1171_v58  }
 0x115   : > { %v506_v59 = vpop.permute.xlu2 %505 }
 0x11d   : > { %v500_v4 = vpop.permute.xlu2 %499 }
 0x124   : > { %1546 = vmatmul.msk.bf16.gmra.mxu1 %vm516_vm5, %v1657_v48 }
 0x125   : > { %v504_v63 = vpop.permute.xlu1 %503  ;;  %v767_v11 = vpop.permute.xlu2 %766 }
 0x126   : > { %v775_v0 = vpop.permute.xlu0 %774  ;;  %v511_v1 = vsel %vm507_vm3, %v504_v63, %v506_v59  ;;  %v1665_v59 = vld [vmem:[%s2381_s2 + $0x70] sm:$0xff] }
 0x127   : > { %545 = vmatpush.bf16.msra.mxu0 %v511_v1  ;;  %v780_v5 = vsel %vm776_vm4, %v773_v57, %v775_v0  ;;  %v1169_v57 = vld [vmem:[%s2384_s5 + $0x28] sm:$0xff]  ;;  %v1174_v63 = vld [vmem:[%s2384_s5 + $0x50] sm:$0xff]  ;;  %v1175_v1 = vld [vmem:[%s2384_s5 + $0x58] sm:$0xff] }
 0x128   : > { %813 = vmatpush.bf16.msra.mxu2 %v780_v5  ;;  %1205 = vperm.xlu1 %1730, %v1169_v57   ;;  %v1674_v5 = vld [vmem:[%s2381_s2 + $0xb8] sm:$0xff] }
 0x129   : > { %1230 = vperm.xlu0 %1729, %v1174_v63  }
 0x12d   : > { %v771_v7 = vpop.permute.xlu1 %770  ;;  %v761_v19 = vpop.permute.xlu2 %760 }
 0x12e   : > { %v769_v9 = vpop.permute.xlu0 %768 }
 0x12f   : > { %v779_v10 = vsel %vm776_vm4, %v769_v9, %v771_v7  ;;  %v1170_v7 = vld [vmem:[%s2384_s5 + $0x30] sm:$0xff] }
 0x130   : > { %814 = vmatpush.bf16.msra.mxu2 %v779_v10  ;;  %1220 = vperm.xlu1 %1730, %v1172_v61  }
 0x131   : > { %1245 = vperm.xlu0 %1729, %v1177_v3   ;;  %1210 = vperm.xlu2 %1731, %v1170_v7  }
 0x134   : > { %1547 = vmatmul.msk.bf16.gmra.mxu1 %vm516_vm5, %v1658_v53 }
 0x135   : > { %v765_v13 = vpop.permute.xlu1 %764  ;;  %v494_v25 = vpop.permute.xlu2 %493 }
 0x136   : > { %v502_v16 = vpop.permute.xlu0 %501  ;;  %v778_v17 = vsel %vm776_vm4, %v765_v13, %v767_v11 }
 0x137   : > { %v510_v18 = vsel %vm507_vm3, %v500_v4, %v502_v16  ;;  %815 = vmatpush.bf16.msra.mxu2 %v778_v17  ;;  %v1666_v4 = vld [vmem:[%s2381_s2 + $0x78] sm:$0xff] }
 0x138   : > { %546 = vmatpush.bf16.msra.mxu0 %v510_v18  ;;  %1235 = vperm.xlu1 %1730, %v1175_v1  }
 0x139   : > { %1225 = vperm.xlu2 %1731, %v1173_v8  }
 0x13d   : > { %v498_v21 = vpop.permute.xlu1 %497 }
 0x13e   : > { %v496_v23 = vpop.permute.xlu0 %495 }
 0x13f   : > { %v509_v24 = vsel %vm507_vm3, %v496_v23, %v498_v21 }
 0x140   : > { %547 = vmatpush.bf16.msra.mxu0 %v509_v24 }
 0x141   : > { %v663_v0 = vpop.f32.mrf.mxu1  ;;  %1240 = vperm.xlu2 %1731, %v1176_v12  }
 0x145   : > { %v492_v26 = vpop.permute.xlu1 %491 }
 0x146   : > { %v763_v29 = vpop.permute.xlu0 %762  ;;  %v508_v30 = vsel %vm507_vm3, %v492_v26, %v494_v25 }
 0x147   : > { %548 = vmatpush.bf16.msra.mxu0 %v508_v30  ;;  %v777_v32 = vsel %vm776_vm4, %v761_v19, %v763_v29 }
 0x148   : > { %816 = vmatpush.bf16.msra.mxu2 %v777_v32 }
 0x149   : > { %v665_v6 = vpop.f32.mrf.mxu1 }
 0x14a   : > { %1500 = vmatmul.msk.bf16.vlgmr.msra.gmra.mxu0 %vm516_vm5, %v1659_v31 }
 0x14b   : > { %1596 = vmatmul.msk.bf16.vlgmr.msra.gmra.mxu2 %vm516_vm5, %v1667_v33 }
 0x14e   : > { %v2232_v48 = vpop.permute.xlu0 %962 }
 0x151   : > { %v668_v9 = vpop.f32.mrf.mxu1 }
 0x156   : > { %v948_v56 = vpop.permute.xlu0 %947 }
 0x159   : > { %v670_v13 = vpop.f32.mrf.mxu1 }
 0x15a   : > { %1501 = vmatmul.msk.bf16.gmra.mxu0 %vm516_vm5, %v1660_v37 }
 0x15b   : > { %1597 = vmatmul.msk.bf16.gmra.mxu2 %vm516_vm5, %v1668_v38 }
 0x15e   : > { %v2240_v3 = vpop.permute.xlu0 %922 }
 0x161   : > { %v673_v19 = vpop.f32.mrf.mxu1 }
 0x169   : > { %v675_v27 = vpop.f32.mrf.mxu1 }
 0x16a   : > { %1502 = vmatmul.msk.bf16.gmra.mxu0 %vm516_vm5, %v1661_v42  ;;  %v2228_v42 = vpop.permute.xlu1 %967 }
 0x16b   : > { %1598 = vmatmul.msk.bf16.gmra.mxu2 %vm516_vm5, %v1669_v43 }
 0x171   : > { %v678_v32 = vpop.f32.mrf.mxu1 }
 0x179   : > { %v680_v37 = vpop.f32.mrf.mxu1 }
 0x17a   : > { %1503 = vmatmul.msk.bf16.gmra.mxu0 %vm516_vm5, %v1662_v46 }
 0x17b   : > { %1599 = vmatmul.msk.bf16.gmra.mxu2 %vm516_vm5, %v1670_v47 }
 0x181   : > { %v683_v44 = vpop.f32.mrf.mxu1 }
 0x18a   : > { %1504 = vmatmul.msk.bf16.gmra.mxu0 %vm516_vm5, %v1663_v49  ;;  %v2234_v49 = vpop.permute.xlu2 %952 }
 0x18b   : > { %1600 = vmatmul.msk.bf16.gmra.mxu2 %vm516_vm5, %v1671_v50  ;;  %v2236_v50 = vpop.permute.xlu1 %957 }
 0x192   : > { %v943_v57 = vpop.permute.xlu2 %942 }
 0x193   : > { %v933_v61 = vpop.permute.xlu1 %932 }
 0x19a   : > { %1505 = vmatmul.msk.bf16.gmra.mxu0 %vm516_vm5, %v1664_v54 }
 0x19b   : > { %1601 = vmatmul.msk.bf16.gmra.mxu2 %vm516_vm5, %v1672_v55  ;;  %v685_v55 = vpop.f32.mrf.mxu1 }
 0x1a3   : > { %v688_v63 = vpop.f32.mrf.mxu1 }
 0x1aa   : > { %1506 = vmatmul.msk.bf16.gmra.mxu0 %vm516_vm5, %v1665_v59 }
 0x1ab   : > { %1602 = vmatmul.msk.bf16.gmra.mxu2 %vm516_vm5, %v1673_v60  ;;  %v690_v12 = vpop.f32.mrf.mxu1 }
 0x1ba   : > { %1507 = vmatmul.msk.bf16.gmra.mxu0 %vm516_vm5, %v1666_v4 }
 0x1bb   : > { %1603 = vmatmul.msk.bf16.gmra.mxu2 %vm516_vm5, %v1674_v5 }
 0x1c7   : > { %v550_v10 = vpop.f32.mrf.mxu0 }
 0x1c8   : > { %v664_v11 = vadd.f32 %v663_v0, %v550_v10 }
 0x1ce   : > { %v818_v14 = vpop.f32.mrf.mxu2 }
 0x1cf   : > { %v2216_v15 = vadd.f32 %v818_v14, %v664_v11  ;;  %v552_v16 = vpop.f32.mrf.mxu0  ;;  %v2242_v14 = vpop.permute.xlu1 %927 }
 0x1d0   : > { %v666_v17 = vadd.f32 %v665_v6, %v552_v16  ;;  %v938_v6 = vpop.permute.xlu2 %937 }
 0x1d6   : > { %v820_v18 = vpop.f32.mrf.mxu2 }
 0x1d7   : > { %v2218_v20 = vadd.f32 %v820_v18, %v666_v17  ;;  %v555_v21 = vpop.f32.mrf.mxu0  ;;  %v2244_v18 = vpop.permute.xlu0 %917 }
 0x1d8   : > { %v669_v22 = vadd.f32 %v668_v9, %v555_v21 }
 0x1de   : > { %v823_v23 = vpop.f32.mrf.mxu2 }
 0x1df   : > { %v2220_v24 = vadd.f32 %v823_v23, %v669_v22  ;;  %v557_v25 = vpop.f32.mrf.mxu0 }
 0x1e0   : > { %v671_v26 = vadd.f32 %v670_v13, %v557_v25 }
 0x1e6   : > { %v825_v28 = vpop.f32.mrf.mxu2 }
 0x1e7   : > { %v2222_v29 = vadd.f32 %v825_v28, %v671_v26  ;;  %v560_v30 = vpop.f32.mrf.mxu0  ;;  %v693_v28 = vpop.f32.mrf.mxu1 }
 0x1e8   : > { %v674_v31 = vadd.f32 %v673_v19, %v560_v30 }
 0x1ee   : > { %v828_v33 = vpop.f32.mrf.mxu2 }
 0x1ef   : > { %v2224_v34 = vadd.f32 %v828_v33, %v674_v31  ;;  %v562_v35 = vpop.f32.mrf.mxu0 }
 0x1f0   : > { %v676_v36 = vadd.f32 %v675_v27, %v562_v35  ;;  %v2246_v35 = vpop.permute.xlu1 %902 }
 0x1f6   : > { %v830_v38 = vpop.f32.mrf.mxu2 }
 0x1f7   : > { %v2226_v39 = vadd.f32 %v830_v38, %v676_v36  ;;  %v565_v40 = vpop.f32.mrf.mxu0 }
 0x1f8   : > { %v679_v41 = vadd.f32 %v678_v32, %v565_v40 }
 0x1fe   : > { %v833_v43 = vpop.f32.mrf.mxu2 }
 0x1ff   : > { %v2230_v45 = vadd.f32 %v833_v43, %v679_v41  ;;  %v567_v46 = vpop.f32.mrf.mxu0  ;;  %v893_v43 = vpop.permute.xlu0 %892 }
 0x200   : > { %v681_v47 = vadd.f32 %v680_v37, %v567_v46 }
 0x206   : > { %v835_v51 = vpop.f32.mrf.mxu2 }
 0x207   : > { %v2238_v52 = vadd.f32 %v835_v51, %v681_v47  ;;  %v570_v53 = vpop.f32.mrf.mxu0 }
 0x208   : > { %v684_v54 = vadd.f32 %v683_v44, %v570_v53 }
 0x20e   : > { %v838_v58 = vpop.f32.mrf.mxu2 }
 0x20f   : > { %v866_v59 = vadd.f32 %v838_v58, %v684_v54  ;;  %v572_v60 = vpop.f32.mrf.mxu0 }
 0x210   : > { %v686_v1 = vadd.f32 %v685_v55, %v572_v60 }
 0x211   : > { %v978_v62 = vadd.f32 %v933_v61, %v866_v59 }
 0x213   : > { %v1604_v0 = vmul.f32 -1.442695, %v978_v62 }
 0x215   : > { %1732 = vpow2.f32 %v1604_v0 }
 0x216   : > { %v840_v2 = vpop.f32.mrf.mxu2 }
 0x217   : > { %v867_v4 = vadd.f32 %v840_v2, %v686_v1  ;;  %v575_v5 = vpop.f32.mrf.mxu0 }
 0x218   : > { %v689_v10 = vadd.f32 %v688_v63, %v575_v5  ;;  %v695_v63 = vpop.f32.mrf.mxu1 }
 0x219   : > { %v979_v7 = vadd.f32 %v938_v6, %v867_v4 }
 0x21b   : > { %v1733_v8 = vpop.eup %1732  ;;  %v1605_v9 = vmul.f32 -1.442695, %v979_v7  ;;  %v898_v7 = vpop.permute.xlu1 %897 }
 0x21c   : > { %v1010_v11 = vadd.f32 1.0, %v1733_v8 }
 0x21d   : > { %1734 = vpow2.f32 %v1605_v9 }
 0x21e   : > { %1736 = vrcp.f32 %v1010_v11  ;;  %v843_v13 = vpop.f32.mrf.mxu2  ;;  %v1029_v38 = vand.u32 2147483648, %v1010_v11  ;;  %v1027_v40 = vand.u32 2147483647, %v1010_v11  ;;  %vm1023_vm7 = vweird.f32 %v1010_v11 }
 0x21f   : > { %v868_v16 = vadd.f32 %v843_v13, %v689_v10  ;;  %v577_v17 = vpop.f32.mrf.mxu0 }
 0x220   : > { %v691_v26 = vadd.f32 %v690_v12, %v577_v17  ;;  %v1030_v55 = vor.u32 1.1754944e-38, %v1029_v38  ;;  %vm1028_vm9 = vcmp.eq.f32.partialorder %v1027_v40, 8.507059e+37 }
 0x221   : > { %v980_v19 = vadd.f32 %v943_v57, %v868_v16 }
 0x223   : > { %v1735_v21 = vpop.eup %1734  ;;  %v1606_v22 = vmul.f32 -1.442695, %v980_v19 }
 0x224   : > { %v1737_v23 = vpop.eup %1736  ;;  %v1011_v25 = vadd.f32 1.0, %v1735_v21 }
 0x225   : > { %1738 = vpow2.f32 %v1606_v22  ;;  %v1019_v27 = vmul.f32 %v1737_v23, %v1010_v11  ;;  %vm1024_vm6 = vweird.f32 %v1737_v23 }
 0x226   : > { %1740 = vrcp.f32 %v1011_v25  ;;  %v845_v30 = vpop.f32.mrf.mxu2  ;;  %vm1025_vm8 = vmor %vm1023_vm7, %vm1024_vm6  ;;  %v1044_v0 = vand.u32 2147483648, %v1011_v25  ;;  %v1042_v5 = vand.u32 2147483647, %v1011_v25  ;;  %vm1038_vm11 = vweird.f32 %v1011_v25 }
 0x227   : > { %v869_v31 = vadd.f32 %v845_v30, %v691_v26  ;;  %v580_v32 = vpop.f32.mrf.mxu0  ;;  %v1020_v33 = vsub.f32 1.0, %v1019_v27  ;;  %v2262_v26 = vpop.permute.xlu2 %912 }
 0x228   : > { %v694_v46 = vadd.f32 %v693_v28, %v580_v32  ;;  %v1045_v11 = vor.u32 1.1754944e-38, %v1044_v0  ;;  %vm1043_vm13 = vcmp.eq.f32.partialorder %v1042_v5, 8.507059e+37  ;;  %v698_v30 = vpop.f32.mrf.mxu1 }
 0x229   : > { %v981_v36 = vadd.f32 %v948_v56, %v869_v31  ;;  %v1021_v37 = vmul.f32 %v1737_v23, %v1020_v33  ;;  %v970_v56 = vadd.f32 %v893_v43, %v2216_v15 }
 0x22b   : > { %v1739_v41 = vpop.eup %1738  ;;  %v1607_v44 = vmul.f32 -1.442695, %v981_v36  ;;  %v1022_v47 = vadd.f32 %v1737_v23, %v1021_v37 }
 0x22c   : > { %v1741_v51 = vpop.eup %1740  ;;  %v2248_v53 = vadd.f32 1.0, %v1739_v41 }
 0x22d   : > { %1742 = vpow2.f32 %v1607_v44  ;;  %v1026_v54 = vsel %vm1025_vm8, %v1737_v23, %v1022_v47  ;;  %v1034_v57 = vmul.f32 %v1741_v51, %v1011_v25  ;;  %vm1039_vm10 = vweird.f32 %v1741_v51 }
 0x22e   : > { %1744 = vrcp.f32 %v2248_v53  ;;  %v848_v58 = vpop.f32.mrf.mxu2  ;;  %v1031_v61 = vsel %vm1028_vm9, %v1030_v55, %v1026_v54  ;;  %vm1040_vm12 = vmor %vm1038_vm11, %vm1039_vm10  ;;  %vm1053_vm15 = vweird.f32 %v2248_v53  ;;  %v1057_v44 = vand.u32 2147483647, %v2248_v53 }
 0x22f   : > { %v870_v59 = vadd.f32 %v848_v58, %v694_v46  ;;  %v582_v60 = vpop.f32.mrf.mxu0  ;;  %v1035_v62 = vsub.f32 1.0, %v1034_v57  ;;  %v2252_v1 = vmul.f32 %v1031_v61, %v970_v56 }
 0x230   : > { %v696_v12 = vadd.f32 %v695_v63, %v582_v60  ;;  %vm1058_vm2 = vcmp.eq.f32.partialorder %v1057_v44, 8.507059e+37 }
 0x231   : > { %v982_v2 = vadd.f32 %v2234_v49, %v870_v59  ;;  %v1036_v4 = vmul.f32 %v1741_v51, %v1035_v62  ;;  %v971_v49 = vadd.f32 %v898_v7, %v2218_v20 }
 0x233   : > { %v1743_v6 = vpop.eup %1742  ;;  %v1608_v15 = vmul.f32 -1.442695, %v982_v2  ;;  %v1037_v8 = vadd.f32 %v1741_v51, %v1036_v4  ;;  %v700_v2 = vpop.f32.mrf.mxu1 }
 0x234   : > { %v1745_v9 = vpop.eup %1744  ;;  %v2255_v10 = vadd.f32 1.0, %v1743_v6 }
 0x235   : > { %1746 = vpow2.f32 %v1608_v15  ;;  %v1049_v13 = vmul.f32 %v1745_v9, %v2248_v53  ;;  %v1041_v16 = vsel %vm1040_vm12, %v1741_v51, %v1037_v8  ;;  %vm1054_vm14 = vweird.f32 %v1745_v9 }
 0x236   : > { %1748 = vrcp.f32 %v2255_v10  ;;  %v850_v17 = vpop.f32.mrf.mxu2  ;;  %v1046_v22 = vsel %vm1043_vm13, %v1045_v11, %v1041_v16  ;;  %vm2274_vm0 = vmor %vm1053_vm15, %vm1054_vm14  ;;  %v1074_v51 = vand.u32 2147483648, %v2255_v10  ;;  %v1072_v59 = vand.u32 2147483647, %v2255_v10 }
 0x237   : > { %v871_v19 = vadd.f32 %v850_v17, %v696_v12  ;;  %v1050_v21 = vsub.f32 1.0, %v1049_v13  ;;  %v585_v23 = vpop.f32.mrf.mxu0  ;;  %v2260_v25 = vmul.f32 %v1046_v22, %v971_v49  ;;  %vm1068_vm3 = vweird.f32 %v2255_v10 }
 0x238   : > { %v699_v33 = vadd.f32 %v698_v30, %v585_v23  ;;  %v1075_v4 = vor.u32 1.1754944e-38, %v1074_v51  ;;  %v972_v15 = vadd.f32 %v2246_v35, %v2220_v24  ;;  %vm1073_vm6 = vcmp.eq.f32.partialorder %v1072_v59, 8.507059e+37 }
 0x239   : > { %v983_v27 = vadd.f32 %v2236_v50, %v871_v19  ;;  %v1051_v28 = vmul.f32 %v1745_v9, %v1050_v21  ;;  %v1160_v31 = vpack.c.bf16 %v2260_v25, %v2252_v1  ;;  %v1059_v50 = vand.u32 2147483648, %v2248_v53  ;;  %v908_v53 = vpop.permute.xlu2 %907  ;;  %v1679_v1 = vld [vmem:[%s2383_s4 + $0x20] sm:$0xff]  ;;  %v1680_v25 = vld [vmem:[%s2383_s4 + $0x28] sm:$0xff] }
 0x23a   : > { %v973_v8 = vadd.f32 %v908_v53, %v2222_v29  ;;  %v974_v51 = vadd.f32 %v2262_v26, %v2224_v34 }
 0x23b   : > { %v1747_v20 = vpop.eup %1746  ;;  %v1609_v32 = vmul.f32 -1.442695, %v983_v27  ;;  %v1052_v38 = vadd.f32 %v1745_v9, %v1051_v28  ;;  %v1060_v58 = vor.u32 1.1754944e-38, %v1059_v50 }
 0x23c   : > { %v1749_v36 = vpop.eup %1748  ;;  %v2267_v37 = vadd.f32 1.0, %v1747_v20 }
 0x23d   : > { %1750 = vpow2.f32 %v1609_v32  ;;  %v1064_v40 = vmul.f32 %v1749_v36, %v2255_v10  ;;  %v1056_v55 = vsel %vm2274_vm0, %v1745_v9, %v1052_v38  ;;  %vm1069_vm1 = vweird.f32 %v1749_v36 }
 0x23e   : > { %1752 = vrcp.f32 %v2267_v37  ;;  %v853_v41 = vpop.f32.mrf.mxu2  ;;  %vm1070_vm4 = vmor %vm1068_vm3, %vm1069_vm1  ;;  %v1089_v27 = vand.u32 2147483648, %v2267_v37  ;;  %vm1083_vm8 = vweird.f32 %v2267_v37 }
 0x23f   : > { %v872_v43 = vadd.f32 %v853_v41, %v699_v33  ;;  %v1065_v46 = vsub.f32 1.0, %v1064_v40  ;;  %v587_v56 = vpop.f32.mrf.mxu0 }
 0x240   : > { %v701_v5 = vadd.f32 %v700_v2, %v587_v56  ;;  %v1090_v40 = vor.u32 1.1754944e-38, %v1089_v27 }
 0x241   : > { %v984_v54 = vadd.f32 %v2232_v48, %v872_v43  ;;  %v1066_v57 = vmul.f32 %v1749_v36, %v1065_v46  ;;  %v1061_v48 = vsel %vm1058_vm2, %v1060_v58, %v1056_v55 }
 0x242   : > { %v2288_v13 = vmul.f32 %v1061_v48, %v972_v15  ;;  %v977_v15 = vadd.f32 %v2242_v14, %v2238_v52  ;;  %v1676_v52 = vld [vmem:[%s2383_s4 + $0x8] sm:$0xff]  ;;  %v1678_v14 = vld [vmem:[%s2383_s4 + $0x18] sm:$0xff] }
 0x243   : > { %v1751_v60 = vpop.eup %1750  ;;  %v1610_v61 = vmul.f32 -1.442695, %v984_v54  ;;  %v1067_v62 = vadd.f32 %v1749_v36, %v1066_v57  ;;  %v975_v54 = vadd.f32 %v2244_v18, %v2226_v39 }
 0x244   : > { %v1753_v63 = vpop.eup %1752  ;;  %v1015_v0 = vadd.f32 1.0, %v1751_v60 }
 0x245   : > { %1754 = vpow2.f32 %v1610_v61  ;;  %v1079_v6 = vmul.f32 %v1753_v63, %v2267_v37  ;;  %v1071_v7 = vsel %vm1070_vm4, %v1749_v36, %v1067_v62  ;;  %vm1084_vm7 = vweird.f32 %v1753_v63 }
 0x246   : > { %1756 = vrcp.f32 %v1015_v0  ;;  %v855_v9 = vpop.f32.mrf.mxu2  ;;  %v1076_v12 = vsel %vm1073_vm6, %v1075_v4, %v1071_v7  ;;  %vm2298_vm9 = vmor %vm1083_vm8, %vm1084_vm7  ;;  %v1104_v32 = vand.u32 2147483648, %v1015_v0  ;;  %v1102_v36 = vand.u32 2147483647, %v1015_v0 }
 0x247   : > { %v873_v10 = vadd.f32 %v855_v9, %v701_v5  ;;  %v1080_v11 = vsub.f32 1.0, %v1079_v6  ;;  %v2290_v16 = vmul.f32 %v1076_v12, %v973_v8  ;;  %vm1098_vm11 = vweird.f32 %v1015_v0 }
 0x248   : > { %v1105_v47 = vor.u32 1.1754944e-38, %v1104_v32  ;;  %vm1103_vm14 = vcmp.eq.f32.partialorder %v1102_v36, 8.507059e+37  ;;  %v976_v7 = vadd.f32 %v2240_v3, %v2230_v45  ;;  %v1675_v45 = vld [vmem:[%s2383_s4] sm:$0xff]  ;;  %v1677_v3 = vld [vmem:[%s2383_s4 + $0x10] sm:$0xff] }
 0x249   : > { %v985_v49 = vadd.f32 %v2228_v42, %v873_v10  ;;  %v1081_v17 = vmul.f32 %v1753_v63, %v1080_v11  ;;  %v1161_v19 = vpack.c.bf16 %v2290_v16, %v2288_v13  ;;  %v1087_v42 = vand.u32 2147483647, %v2267_v37  ;;  %v1181_v13 = vpop.permute.xlu2 %1180 }
 0x24b   : > { %v1755_v21 = vpop.eup %1754  ;;  %v1611_v24 = vmul.f32 -1.442695, %v985_v49  ;;  %v1082_v23 = vadd.f32 %v1753_v63, %v1081_v17  ;;  %vm1088_vm12 = vcmp.eq.f32.partialorder %v1087_v42, 8.507059e+37  ;;  %v1186_v17 = vpop.permute.xlu0 %1185 }
 0x24c   : > { %v1757_v35 = vpop.eup %1756  ;;  %v1016_v29 = vadd.f32 1.0, %v1755_v21 }
 0x24d   : > { %1758 = vpow2.f32 %v1611_v24  ;;  %v1094_v22 = vmul.f32 %v1757_v35, %v1015_v0  ;;  %vm1099_vm10 = vweird.f32 %v1757_v35  ;;  %v1086_v33 = vsel %vm2298_vm9, %v1753_v63, %v1082_v23  ;;  %v1191_v24 = vpop.permute.xlu1 %1190 }
 0x24e   : > { %1760 = vrcp.f32 %v1016_v29  ;;  %vm1100_vm13 = vmor %vm1098_vm11, %vm1099_vm10  ;;  %v1091_v44 = vsel %vm1088_vm12, %v1090_v40, %v1086_v33  ;;  %v1119_v63 = vand.u32 2147483648, %v1016_v29  ;;  %vm1113_vm0 = vweird.f32 %v1016_v29 }
 0x24f   : > { %v1095_v28 = vsub.f32 1.0, %v1094_v22  ;;  %v1142_v56 = vmul.f32 %v1091_v44, %v974_v51  ;;  %v1117_v0 = vand.u32 2147483647, %v1016_v29 }
 0x250   : > { %v1120_v48 = vor.u32 1.1754944e-38, %v1119_v63 }
 0x251   : > { %v1096_v20 = vmul.f32 %v1757_v35, %v1095_v28  ;;  %vm1118_vm3 = vcmp.eq.f32.partialorder %v1117_v0, 8.507059e+37  ;;  %v1196_v22 = vpop.permute.xlu2 %1195 }
 0x253   : > { %v1759_v38 = vpop.eup %1758  ;;  %v1097_v41 = vadd.f32 %v1757_v35, %v1096_v20  ;;  %v1201_v28 = vpop.permute.xlu0 %1200 }
 0x254   : > { %v1761_v50 = vpop.eup %1760  ;;  %v1017_v43 = vadd.f32 1.0, %v1759_v38 }
 0x255   : > { %v1109_v37 = vmul.f32 %v1761_v50, %v1016_v29  ;;  %v1101_v46 = vsel %vm1100_vm13, %v1757_v35, %v1097_v41  ;;  %vm1114_vm15 = vweird.f32 %v1761_v50  ;;  %v1206_v20 = vpop.permute.xlu1 %1205 }
 0x256   : > { %1762 = vrcp.f32 %v1017_v43  ;;  %v1106_v57 = vsel %vm1103_vm14, %v1105_v47, %v1101_v46  ;;  %vm1115_vm1 = vmor %vm1113_vm0, %vm1114_vm15  ;;  %v1134_v34 = vand.u32 2147483648, %v1017_v43  ;;  %v1132_v18 = vand.u32 2147483647, %v1017_v43 }
 0x257   : > { %v1110_v55 = vsub.f32 1.0, %v1109_v37  ;;  %v1143_v58 = vmul.f32 %v1106_v57, %v975_v54  ;;  %vm1128_vm4 = vweird.f32 %v1017_v43 }
 0x258   : > { %v1135_v6 = vor.u32 1.1754944e-38, %v1134_v34  ;;  %vm1133_vm7 = vcmp.eq.f32.partialorder %v1132_v18, 8.507059e+37 }
 0x259   : > { %v1111_v59 = vmul.f32 %v1761_v50, %v1110_v55  ;;  %v1162_v60 = vpack.c.bf16 %v1143_v58, %v1142_v56  ;;  %v1211_v36 = vpop.permute.xlu2 %1210 }
 0x25b   : > { %v1112_v61 = vadd.f32 %v1761_v50, %v1111_v59  ;;  %v1216_v41 = vpop.permute.xlu0 %1215 }
 0x25c   : > { %v1763_v53 = vpop.eup %1762 }
 0x25d   : > { %v1124_v62 = vmul.f32 %v1763_v53, %v1017_v43  ;;  %v1116_v26 = vsel %vm1115_vm1, %v1761_v50, %v1112_v61  ;;  %vm1129_vm2 = vweird.f32 %v1763_v53  ;;  %v1221_v37 = vpop.permute.xlu1 %1220 }
 0x25e   : > { %v1121_v5 = vsel %vm1118_vm3, %v1120_v48, %v1116_v26  ;;  %vm1130_vm6 = vmor %vm1128_vm4, %vm1129_vm2 }
 0x25f   : > { %v1125_v2 = vsub.f32 1.0, %v1124_v62  ;;  %v1144_v10 = vmul.f32 %v1121_v5, %v976_v7 }
 0x261   : > { %v1126_v39 = vmul.f32 %v1763_v53, %v1125_v2  ;;  %v1226_v47 = vpop.permute.xlu2 %1225 }
 0x263   : > { %v1127_v4 = vadd.f32 %v1763_v53, %v1126_v39  ;;  %v1231_v55 = vpop.permute.xlu0 %1230 }
 0x265   : > { %v1131_v8 = vsel %vm1130_vm6, %v1763_v53, %v1127_v4  ;;  %v1236_v58 = vpop.permute.xlu1 %1235 }
 0x266   : > { %v1136_v9 = vsel %vm1133_vm7, %v1135_v6, %v1131_v8 }
 0x267   : > { %v1145_v11 = vmul.f32 %v1136_v9, %v977_v15 }
 0x269   : > { %v1163_v12 = vpack.c.bf16 %v1145_v11, %v1144_v10  ;;  %v1241_v53 = vpop.permute.xlu2 %1240 }
 0x26b   : > { %1308 = vmatpush.bf16.msra.mxu3 %v1163_v12  ;;  %v1246_v63 = vpop.permute.xlu0 %1245 }
 0x26f   : > { %1309 = vmatpush.bf16.msra.mxu3 %v1162_v60 }
 0x273   : > { %1310 = vmatpush.bf16.msra.mxu3 %v1161_v19 }
 0x277   : > { %1311 = vmatpush.bf16.msra.mxu3 %v1160_v31  ;;  %v1681_v31 = vld [vmem:[%s2383_s4 + $0x30] sm:$0xff] }
 0x27a   : > { %1640 = vmatmul.msk.bf16.vlgmr.msra.gmra.mxu3 %vm516_vm5, %v1675_v45 }
 0x28a   : > { %1641 = vmatmul.msk.bf16.gmra.mxu3 %vm516_vm5, %v1676_v52 }
 0x29a   : > { %1642 = vmatmul.msk.bf16.gmra.mxu3 %vm516_vm5, %v1677_v3 }
 0x2aa   : > { %1643 = vmatmul.msk.bf16.gmra.mxu3 %vm516_vm5, %v1678_v14 }
 0x2ba   : > { %1644 = vmatmul.msk.bf16.gmra.mxu3 %vm516_vm5, %v1679_v1 }
 0x2ca   : > { %1645 = vmatmul.msk.bf16.gmra.mxu3 %vm516_vm5, %v1680_v25 }
 0x2da   : > { %1646 = vmatmul.msk.bf16.gmra.mxu3 %vm516_vm5, %v1681_v31 }
 0x2fd   : > { %v1313_v16 = vpop.f32.mrf.mxu3 }
 0x2fe   : > { %v1314_v49 = vadd.f32 %v1313_v16, %v1181_v13 }
 0x300   : > { %1348 = vst [vmem:[%s2350_s14] sm:$0xff] %v1314_v49 }
 0x305   : > { %v1315_v19 = vpop.f32.mrf.mxu3 }
 0x306   : > { %v1316_v21 = vadd.f32 %v1315_v19, %v1186_v17 }
 0x308   : > { %1349 = vst [vmem:[%s2350_s14 + $0x8] sm:$0xff] %v1316_v21 }
 0x30d   : > { %v1318_v35 = vpop.f32.mrf.mxu3 }
 0x30e   : > { %v1319_v29 = vadd.f32 %v1318_v35, %v1191_v24 }
 0x310   : > { %1350 = vst [vmem:[%s2350_s14 + $0x10] sm:$0xff] %v1319_v29 }
 0x315   : > { %v1320_v23 = vpop.f32.mrf.mxu3 }
 0x316   : > { %v1321_v27 = vadd.f32 %v1320_v23, %v1196_v22 }
 0x318   : > { %1351 = vst [vmem:[%s2350_s14 + $0x18] sm:$0xff] %v1321_v27 }
 0x31d   : > { %v1323_v42 = vpop.f32.mrf.mxu3 }
 0x31e   : > { %v1324_v30 = vadd.f32 %v1323_v42, %v1201_v28 }
 0x320   : > { %1352 = vst [vmem:[%s2350_s14 + $0x20] sm:$0xff] %v1324_v30 }
 0x325   : > { %v1325_v32 = vpop.f32.mrf.mxu3 }
 0x326   : > { %v1326_v33 = vadd.f32 %v1325_v32, %v1206_v20 }
 0x328   : > { %1353 = vst [vmem:[%s2350_s14 + $0x28] sm:$0xff] %v1326_v33 }
 0x32d   : > { %v1328_v38 = vpop.f32.mrf.mxu3 }
 0x32e   : > { %v1329_v40 = vadd.f32 %v1328_v38, %v1211_v36 }
 0x330   : > { %1354 = vst [vmem:[%s2350_s14 + $0x30] sm:$0xff] %v1329_v40 }
 0x335   : > { %v1330_v50 = vpop.f32.mrf.mxu3 }
 0x336   : > { %v1331_v43 = vadd.f32 %v1330_v50, %v1216_v41 }
 0x338   : > { %1355 = vst [vmem:[%s2350_s14 + $0x38] sm:$0xff] %v1331_v43 }
 0x33d   : > { %v1333_v44 = vpop.f32.mrf.mxu3 }
 0x33e   : > { %v1334_v46 = vadd.f32 %v1333_v44, %v1221_v37 }
 0x340   : > { %1356 = vst [vmem:[%s2350_s14 + $0x40] sm:$0xff] %v1334_v46 }
 0x345   : > { %v1335_v51 = vpop.f32.mrf.mxu3 }
 0x346   : > { %v1336_v54 = vadd.f32 %v1335_v51, %v1226_v47 }
 0x348   : > { %1357 = vst [vmem:[%s2350_s14 + $0x48] sm:$0xff] %v1336_v54 }
 0x34d   : > { %v1338_v57 = vpop.f32.mrf.mxu3 }
 0x34e   : > { %v1339_v56 = vadd.f32 %v1338_v57, %v1231_v55 }
 0x350   : > { %1358 = vst [vmem:[%s2350_s14 + $0x50] sm:$0xff] %v1339_v56 }
 0x355   : > { %v1340_v59 = vpop.f32.mrf.mxu3 }
 0x356   : > { %v1341_v60 = vadd.f32 %v1340_v59, %v1236_v58 }
 0x358   : > { %1359 = vst [vmem:[%s2350_s14 + $0x58] sm:$0xff] %v1341_v60 }
 0x35d   : > { %v1343_v61 = vpop.f32.mrf.mxu3 }
 0x35e   : > { %v1344_v62 = vadd.f32 %v1343_v61, %v1241_v53 }
 0x360   : > { %1360 = vst [vmem:[%s2350_s14 + $0x60] sm:$0xff] %v1344_v62 }
 0x365   : > { %v1345_v0 = vpop.f32.mrf.mxu3 }
 0x366   : > { %v1346_v2 = vadd.f32 %v1345_v0, %v1246_v63 }
 0x368   : > { %1361 = vst [vmem:[%s2350_s14 + $0x68] sm:$0xff] %v1346_v2 }
 0x369 PF: > { %p16_p7 = scmp.ge.s32.totalorder %s1894_s26, 6   ;;  %s2393_s21 = smov %s1820_s22 }
 0x36a   : > { %s2394_s22 = smov %s1824_s23  ;;  %s2395_s23 = smov %s1904_s29 }
 0x36b   : > { %s2396_s24 = smov %s1894_s26  ;;  %18 = sbr.rel (!%p16_p7) target bundleno = 3 (0x3), region = 89 }
 0x370   :  { %1383 = vsyncpa [#allocation4], 1 }
 0x371   :  { %1385 = vsyncpa [#allocation4 + $0x1], 1 }

</bundles_post_ra>
